<compile_context>
chip_gen: v7x
topology: tpu7x:2x2x1
jax: 0.10.0
libtpu: 0.0.40
codegen_flags: <defaults>
</compile_context>

<pallas_src>
import jax
import jax.numpy as jnp
from jax.experimental import pallas as pl
from jax.experimental.pallas import tpu as pltpu

_LANES = 128


def _square_kernel(x_ref, o_ref):
    x = x_ref[...]
    o_ref[...] = x * x


def _round_up(x: int, m: int) -> int:
    return ((x + m - 1) // m) * m


def _chip_caps():
    """Returns (block_byte_budget, vmem_limit_bytes_or_None, has_two_tensorcores)."""
    try:
        kind = jax.devices()[0].device_kind.lower()
    except Exception:
        kind = ""
    if "v7" in kind or "tpu7" in kind:
        # v7x: 64 MiB VMEM per TC, 3.2 TB/s HBM, 2 TensorCores per chip.
        return 6 * 1024 * 1024, 40 * 1024 * 1024, True
    if "v6" in kind:
        # v6e: 128 MiB VMEM, ~1.4 TB/s HBM, 1 TensorCore.
        return 6 * 1024 * 1024, 48 * 1024 * 1024, False
    # v5e / unknown: stay inside the 16 MiB default scoped-VMEM limit.
    return 3 * 1024 * 1024, None, False


def _square_2d(x2d, *, sublane, block_bytes, vmem_limit, two_tc):
    rows, lanes = x2d.shape
    dtype = x2d.dtype
    itemsize = jnp.dtype(dtype).itemsize

    # Equal-BYTE blocks regardless of dtype: rows/block from the byte budget.
    budget_rows = max(sublane,
                      (block_bytes // (lanes * itemsize)) // sublane * sublane)

    if rows <= budget_rows:
        if two_tc and rows >= 2 * sublane:
            # Split small inputs in two so both v7x TensorCores get work.
            tile = _round_up(pl.cdiv(rows, 2), sublane)
        else:
            # Single exact block (block == full array dims is always legal).
            tile = rows
    else:
        tile = budget_rows
        if two_tc:
            # >= 4 blocks so both TCs are fed on medium inputs.
            cap = max(sublane, _round_up(pl.cdiv(rows, 4), sublane))
            tile = min(tile, cap)

    grid_len = pl.cdiv(rows, tile)
    if two_tc and grid_len > 1 and grid_len % 2 == 1:
        # Prefer an even grid on 2-TC chips so the halves are balanced.
        tile2 = max(sublane, _round_up(pl.cdiv(rows, grid_len + 1), sublane))
        if pl.cdiv(rows, tile2) % 2 == 0:
            tile = tile2
            grid_len = pl.cdiv(rows, tile)

    cp_kwargs = dict(dimension_semantics=("parallel",))
    if vmem_limit is not None:
        cp_kwargs["vmem_limit_bytes"] = vmem_limit

    return pl.pallas_call(
        _square_kernel,
        out_shape=jax.ShapeDtypeStruct((rows, lanes), dtype),
        grid=(grid_len,),
        in_specs=[pl.BlockSpec((tile, lanes), lambda i: (i, 0))],
        out_specs=pl.BlockSpec((tile, lanes), lambda i: (i, 0)),
        compiler_params=pltpu.CompilerParams(**cp_kwargs),
        cost_estimate=pl.CostEstimate(
            flops=rows * lanes,
            transcendentals=0,
            bytes_accessed=2 * rows * lanes * itemsize),
    )(x2d)


def square_activation(x: jax.Array) -> jax.Array:
    """Elementwise x**2 via a Pallas TPU kernel. Any shape/dtype."""
    orig_shape = x.shape
    n = x.size
    if n == 0:
        return x

    itemsize = jnp.dtype(x.dtype).itemsize
    sublane = max(8, 32 // itemsize)        # f32 -> 8, bf16 -> 16, int8/fp8 -> 32
    block_bytes, vmem_limit, two_tc = _chip_caps()

    x_flat = jnp.ravel(x)

    if n % _LANES == 0:
        # Common case: no pad, no slice — just a (free) reshape.  rows may be
        # any value; Pallas masks the partial edge block along the row axis.
        rows = n // _LANES
        out2d = _square_2d(x_flat.reshape(rows, _LANES), sublane=sublane,
                           block_bytes=block_bytes, vmem_limit=vmem_limit,
                           two_tc=two_tc)
        return out2d.reshape(orig_shape)

    # Unaligned tail (< 128 elems): square the lane-aligned prefix in the kernel
    # and the tail with a tiny jnp op — no whole-array pad/slice passes.
    aligned = (n // _LANES) * _LANES
    tail_sq = x_flat[aligned:] * x_flat[aligned:]
    if aligned == 0:
        return tail_sq.reshape(orig_shape)   # tiny input: kernel not worth it
    head2d = _square_2d(x_flat[:aligned].reshape(aligned // _LANES, _LANES),
                        sublane=sublane, block_bytes=block_bytes,
                        vmem_limit=vmem_limit, two_tc=two_tc)
    return jnp.concatenate([head2d.reshape(aligned), tail_sq]).reshape(orig_shape)


if __name__ == "__main__":
    key = jax.random.PRNGKey(0)
    x = jax.random.normal(key, (2, 4, 16, 16), dtype=jnp.float32)  # NCHW

    y = square_activation(x)
    jax.block_until_ready(y)
    assert y.shape == x.shape and y.dtype == x.dtype
    assert jnp.allclose(y, x ** 2, atol=1e-6, rtol=1e-6)

    # Also exercise the unaligned-tail path (size not a multiple of 128).
    x2 = jax.random.normal(jax.random.PRNGKey(1), (3, 70), dtype=jnp.float32)
    y2 = square_activation(x2)
    jax.block_until_ready(y2)
    assert jnp.allclose(y2, x2 ** 2, atol=1e-6, rtol=1e-6)

    print("KERNEL_OK")
</pallas_src>

<mosaic_0001>
module attributes {stable_mosaic.version = 11 : i64} {
  func.func @_square_kernel(%arg0: i32, %arg1: memref<16x128xf32, #tpu.memory_space<vmem>>, %arg2: memref<16x128xf32, #tpu.memory_space<vmem>>) attributes {dimension_semantics = [#tpu.dimension_semantics<parallel>], iteration_bounds = array<i64: 1>, scalar_prefetch = 0 : i64, scratch_operands = 0 : i64, tpu.core_type = #tpu.core_type<tc>, window_params = [{transform_indices = @transform_0, window_bounds = array<i64: 16, 128>}, {transform_indices = @transform_1, window_bounds = array<i64: 16, 128>}]} {
    %c0 = arith.constant 0 : index
    %c0_0 = arith.constant 0 : index
    %0 = vector.load %arg1[%c0, %c0_0] : memref<16x128xf32, #tpu.memory_space<vmem>>, vector<16x128xf32>
    %1 = arith.mulf %0, %0 : vector<16x128xf32>
    %c0_1 = arith.constant 0 : index
    %c0_2 = arith.constant 0 : index
    %2 = vector.load %arg2[%c0_1, %c0_2] : memref<16x128xf32, #tpu.memory_space<vmem>>, vector<16x128xf32>
    tpu.vector_store %arg2[%c0_1, %c0_2], %1 {strides = array<i32>} : memref<16x128xf32, #tpu.memory_space<vmem>>, vector<16x128xf32>,
    return
  }
  func.func @transform_0(%arg0: i32) -> (i32, i32) {
    %c0_i32 = arith.constant 0 : i32
    %c0_i32_0 = arith.constant 0 : i32
    return %arg0, %c0_i32 : i32, i32
  }
  func.func @transform_1(%arg0: i32) -> (i32, i32) {
    %c0_i32 = arith.constant 0 : i32
    %c0_i32_0 = arith.constant 0 : i32
    return %arg0, %c0_i32 : i32, i32
  }
}

</mosaic_0001>

<bundles_post_ra>
// kernel: tpu_custom_call.1
= control target key start
LH: loop header
LB: loop body
LE: loop exit
PB: predicated region body
PF: predicated region fallthrough
CT: control target
= control target key end

     0   :  { %6 = vsyncpa [#allocation3], 0  ;;  %s136_s0 = inlined_call_operand.hbm [shape: f32[16,128], index: 0, kind: input, shape index: {}]   ;;  %s137_s1 = inlined_call_operand.hbm [shape: f32[16,128], index: 1, kind: output, shape index: {}]  }
   0x1   :  { %7 = vsyncpa [#allocation4], 0  ;;  %s98_s6 = smov [#allocation2]   ;;  %s50_s10 = scalar_lea.hbm %s136_s0, 256 }
   0x2   :  { %s13_s7 = sshll.u32 %s98_s6, 4  ;;  %p51_p0 = scmp.ne.s32.totalorder %s136_s0, %s50_s10  ;;  %s14_s7 = int_to_ptr.vmem [resolvable:$true] %s13_s7 }
   0x3   :  { %p54_p1 = scmp.lt.u32.totalorder %s50_s10, %s136_s0 }
   0x5   :  { %p56_p2 = pnand %p54_p1, %p51_p0 }
   0x7   :  { %59 = shalt.err (!%p56_p2)
}
   0x8   :  { %s60_s15 = scalar_lea.vmem %s14_s7, 256  ;;  %p65_p4 = scmp.lt.s32.totalorder %s14_s7, %s14_s7 }
   0x9   :  { %p61_p3 = scmp.ne.s32.totalorder %s14_s7, %s60_s15  ;;  %p66_p5 = scmp.lt.s32.totalorder %s60_s15, %s60_s15 }
   0xb   :  { %p67_p6 = por %p66_p5, %p65_p4 }
   0xd   :  { %p68_p7 = pnand %p67_p6, %p61_p3 }
   0xf   :  { %71 = shalt.err (!%p68_p7)
}
  0x10   :  { %s99_s16 = smov 128   ;;  %s100_s17 = smov 8  }
  0x11   :  { %19 = dma.hbm_to_vmem [thread:$0]  %s136_s0, 256, %s14_s7, [#allocation3], %s99_s16, %s99_s16, %s100_s17  }
  0x12   :  { %94 = dma.done.wait [#allocation3], 256  }
  0x13   :  { %95 = vsyncadd [#allocation3], 4294967040  ;;  %s101_s20 = smov [#allocation5]   ;;  %v23_v0 = vld [vmem:[#allocation2] sm:$0xff]  ;;  %v24_v1 = vld [vmem:[#allocation2 + $0x8] sm:$0xff] }
  0x14   :  { %s34_s21 = sshll.u32 %s101_s20, 4  ;;  %v25_v2 = vmul.f32 %v23_v0, %v23_v0  ;;  %v26_v3 = vmul.f32 %v24_v1, %v24_v1  ;;  %s35_s21 = int_to_ptr.vmem [resolvable:$true] %s34_s21 }
  0x15   :  { %s72_s22 = scalar_lea.vmem %s35_s21, 256  ;;  %p77_p9 = scmp.lt.s32.totalorder %s35_s21, %s35_s21 }
  0x16   :  { %27 = vst [vmem:[#allocation5] sm:$0xff] %v25_v2  ;;  %28 = vst [vmem:[#allocation5 + $0x8] sm:$0xff] %v26_v3  ;;  %p73_p8 = scmp.ne.s32.totalorder %s35_s21, %s72_s22  ;;  %p78_p10 = scmp.lt.s32.totalorder %s72_s22, %s72_s22 }
  0x18   :  { %p79_p11 = por %p78_p10, %p77_p9 }
  0x1a   :  { %p80_p12 = pnand %p79_p11, %p73_p8 }
  0x1c   :  { %83 = shalt.err (!%p80_p12)
}
  0x1d   :  { %s84_s24 = scalar_lea.hbm %s137_s1, 256 }
  0x1e   :  { %p85_p13 = scmp.ne.s32.totalorder %s137_s1, %s84_s24  ;;  %p88_p0 = scmp.lt.u32.totalorder %s84_s24, %s137_s1 }
  0x20   :  { %p90_p1 = pnand %p88_p0, %p85_p13 }
  0x22   :  { %93 = shalt.err (!%p90_p1)
}
  0x23   :  { %40 = dma.vmem_to_hbm [thread:$0]  %s35_s21, 256, %s137_s1, [#allocation4], %s99_s16, %s99_s16, %s100_s17  }
  0x24   :  { %96 = dma.done.wait [#allocation4], 256  }
  0x25   :  { %97 = vsyncadd [#allocation4], 4294967040 }
  0x26   :  { %44 = vsyncpa [#allocation3], 1 }
  0x27   :  { %45 = vsyncpa [#allocation4], 1 }

</bundles_post_ra>
